<compile_context>
chip_gen: v6e
topology: v6e:2x2x1
jax: 0.10.0
libtpu: 0.0.40
codegen_flags: <defaults>
</compile_context>

<pallas_src>
import functools

import jax
import jax.numpy as jnp
from jax import lax
from jax.experimental import pallas as pl
from jax.experimental.pallas import tpu as pltpu

LN_EPS = 1e-5
MAX_BATCH_TILE = 2048


def _round_up(n, m):
    return ((n + m - 1) // m) * m


def _choose_batch_tile(batch, sublane):
    # Biggest-tile-first heuristic: tiny batches run in a single grid step;
    # everything else splits into as few tiles as possible (>= 2, so both v7x
    # TensorCores get work under "parallel" semantics), capped at 2048 rows per
    # tile so double-buffered x/out tiles stay far inside scoped VMEM.
    b_al = _round_up(batch, sublane)
    if b_al <= 2 * sublane:
        return b_al
    n_steps = max(2, pl.cdiv(b_al, MAX_BATCH_TILE))
    return min(MAX_BATCH_TILE, _round_up(pl.cdiv(b_al, n_steps), sublane))


def _lifelong_kernel(x_ref, w1_ref, b1_ref, w2_ref, b2_ref, g_ref, beta_ref,
                     o_ref, *, matmul_dtype):
    # in_block: Linear + ReLU (MXU matmul, f32 accumulate; bias/ReLU in f32).
    h = jnp.dot(x_ref[...], w1_ref[...], preferred_element_type=jnp.float32)
    h = jnp.maximum(h + b1_ref[...], 0.0)
    # hidden_block: Linear + ReLU.
    h = jnp.dot(h.astype(matmul_dtype), w2_ref[...],
                preferred_element_type=jnp.float32)
    h = jnp.maximum(h + b2_ref[...], 0.0)
    # hidden_normalize: LayerNorm over H2 (biased variance, eps inside the sqrt,
    # affine).  Two-pass (x - mean)^2 form for f32 fidelity vs the torch module.
    mean = jnp.mean(h, axis=-1, keepdims=True)
    c = h - mean
    var = jnp.mean(c * c, axis=-1, keepdims=True)
    o_ref[...] = c * lax.rsqrt(var + LN_EPS) * g_ref[...] + beta_ref[...]


def lifelong_network_forward(x, params, *, batch_tile=None,
                             matmul_dtype=jnp.float32):
    """x: (B, obs_dim). params: dict of w1, b1, w2, b2, gamma, beta."""
    B, F = x.shape
    H1 = params["w1"].shape[1]
    H2 = params["w2"].shape[1]

    matmul_dtype = jnp.dtype(matmul_dtype)
    sublane = 16 if matmul_dtype.itemsize < 4 else 8

    # Pre-cast x in the wrapper (no-op for the default f32 path) so the kernel
    # DMAs the narrow dtype directly and does no per-tile cast.
    x = x.astype(matmul_dtype)

    if batch_tile is None:
        batch_tile = _choose_batch_tile(B, sublane)
    batch_tile = max(sublane, _round_up(int(batch_tile), sublane))
    B_pad = _round_up(B, batch_tile)
    if B_pad != B:  # pad only when the tile does not divide B
        x = jnp.pad(x, ((0, B_pad - B), (0, 0)))

    w1 = params["w1"].astype(matmul_dtype)
    w2 = params["w2"].astype(matmul_dtype)
    b1 = params["b1"].reshape(1, H1).astype(jnp.float32)
    b2 = params["b2"].reshape(1, H2).astype(jnp.float32)
    gamma = params["gamma"].reshape(1, H2).astype(jnp.float32)
    beta = params["beta"].reshape(1, H2).astype(jnp.float32)

    grid = (B_pad // batch_tile,)

    # VMEM budget: double-buffered x/out tiles, (default double-buffered) resident
    # weights, plus in-kernel f32 intermediates and headroom.  Cap at 32 MiB,
    # which is within the scoped default on every generation (incl. v7x 64 MiB).
    wsize = matmul_dtype.itemsize
    weight_bytes = (F * H1 + H1 * H2) * wsize + (H1 + 3 * H2) * 4
    x_tile_bytes = batch_tile * F * x.dtype.itemsize
    out_tile_bytes = batch_tile * H2 * 4
    inter_bytes = batch_tile * (H1 + 4 * H2) * 4
    vmem_limit = (2 * (x_tile_bytes + out_tile_bytes) + 2 * weight_bytes
                  + inter_bytes + (2 << 20))
    vmem_limit = int(min(max(vmem_limit, 4 << 20), 32 << 20))

    # Cost estimate from the real (unpadded) dims and the real output bytes.
    cost = pl.CostEstimate(
        flops=2 * B * (F * H1 + H1 * H2),
        transcendentals=B,  # one rsqrt per row
        bytes_accessed=B * F * x.dtype.itemsize + B * H2 * 4 + weight_bytes,
    )

    # Weights/biases use constant index maps -> resident, never re-fetched.
    full = lambda shape: pl.BlockSpec(shape, lambda i: tuple(0 for _ in shape))

    kernel = functools.partial(_lifelong_kernel, matmul_dtype=matmul_dtype)

    out = pl.pallas_call(
        kernel,
        out_shape=jax.ShapeDtypeStruct((B_pad, H2), jnp.float32),
        grid_spec=pltpu.PrefetchScalarGridSpec(
            num_scalar_prefetch=0,
            grid=grid,
            in_specs=[
                pl.BlockSpec((batch_tile, F), lambda i: (i, 0)),  # x (batch tiles)
                full((F, H1)),    # w1
                full((1, H1)),    # b1
                full((H1, H2)),   # w2
                full((1, H2)),    # b2
                full((1, H2)),    # gamma
                full((1, H2)),    # beta
            ],
            out_specs=pl.BlockSpec((batch_tile, H2), lambda i: (i, 0)),
        ),
        compiler_params=pltpu.CompilerParams(
            dimension_semantics=("parallel",),
            vmem_limit_bytes=vmem_limit,
        ),
        cost_estimate=cost,
    )(x, w1, b1, w2, b2, gamma, beta)

    if B_pad != B:
        out = out[:B]
    return out


def init_params(key, obs_dim, h1, h2):
    k1, k2, k3, k4 = jax.random.split(key, 4)
    lim1 = 1.0 / jnp.sqrt(obs_dim)
    lim2 = 1.0 / jnp.sqrt(h1)
    w1 = jax.random.uniform(k1, (obs_dim, h1), jnp.float32, -lim1, lim1)
    b1 = jax.random.uniform(k2, (1, h1), jnp.float32, -lim1, lim1)
    w2 = jax.random.uniform(k3, (h1, h2), jnp.float32, -lim2, lim2)
    b2 = jax.random.uniform(k4, (1, h2), jnp.float32, -lim2, lim2)
    gamma = jnp.ones((1, h2), jnp.float32)   # LayerNorm default affine init
    beta = jnp.zeros((1, h2), jnp.float32)
    return dict(w1=w1, b1=b1, w2=w2, b2=b2, gamma=gamma, beta=beta)


def reference_forward(x, p, matmul_dtype=jnp.float32):
    d = matmul_dtype
    h = jnp.dot(x.astype(d), p["w1"].astype(d), preferred_element_type=jnp.float32)
    h = jnp.maximum(h + p["b1"], 0.0)
    h = jnp.dot(h.astype(d), p["w2"].astype(d), preferred_element_type=jnp.float32)
    h = jnp.maximum(h + p["b2"], 0.0)
    mean = jnp.mean(h, axis=-1, keepdims=True)
    var = jnp.mean((h - mean) ** 2, axis=-1, keepdims=True)
    return (h - mean) * lax.rsqrt(var + LN_EPS) * p["gamma"] + p["beta"]


if __name__ == "__main__":
    key = jax.random.PRNGKey(0)
    kx, kp = jax.random.split(key)

    # Small RL-sized problem: 256 rows -> 2 grid steps of 128 rows each.
    B, OBS, H1, H2 = 256, 16, 64, 32
    x = jax.random.normal(kx, (B, OBS), jnp.float32)
    params = init_params(kp, OBS, H1, H2)

    # Default f32 path: exact match to the PyTorch module.
    out = jax.block_until_ready(lifelong_network_forward(x, params))
    ref = reference_forward(x, params)
    assert out.shape == (B, H2)
    assert jnp.allclose(out, ref, atol=2e-4, rtol=2e-4), "f32 mismatch"

    # Uneven batch: exercises the pad-final-tile-only path and the output slice.
    out_u = jax.block_until_ready(lifelong_network_forward(x[:50], params))
    assert out_u.shape == (50, H2)
    assert jnp.allclose(out_u, ref[:50], atol=2e-4, rtol=2e-4), "uneven mismatch"

    # Optional bf16-MXU path (halves x/weight DMA): check vs an identically cast
    # reference, plus a coarse sanity check vs the pure-f32 reference.
    out_bf16 = jax.block_until_ready(
        lifelong_network_forward(x, params, matmul_dtype=jnp.bfloat16))
    ref_bf16 = reference_forward(x, params, matmul_dtype=jnp.bfloat16)
    assert out_bf16.shape == (B, H2)
    assert jnp.allclose(out_bf16, ref_bf16, atol=5e-3, rtol=5e-3), "bf16 mismatch"
    assert jnp.allclose(out_bf16, ref, atol=1e-1, rtol=1e-1), "bf16 sanity"

    print("KERNEL_OK")
</pallas_src>

<mosaic_0001>
module attributes {stable_mosaic.version = 11 : i64} {
  func.func @_lifelong_kernel(%arg0: i32, %arg1: memref<128x16xf32, #tpu.memory_space<vmem>>, %arg2: memref<16x64xf32, #tpu.memory_space<vmem>>, %arg3: memref<1x64xf32, #tpu.memory_space<vmem>>, %arg4: memref<64x32xf32, #tpu.memory_space<vmem>>, %arg5: memref<1x32xf32, #tpu.memory_space<vmem>>, %arg6: memref<1x32xf32, #tpu.memory_space<vmem>>, %arg7: memref<1x32xf32, #tpu.memory_space<vmem>>, %arg8: memref<128x32xf32, #tpu.memory_space<vmem>>) attributes {dimension_semantics = [#tpu.dimension_semantics<parallel>], iteration_bounds = array<i64: 2>, scalar_prefetch = 0 : i64, scratch_operands = 0 : i64, tpu.core_type = #tpu.core_type<tc>, window_params = [{transform_indices = @transform_0, window_bounds = array<i64: 128, 16>}, {pipeline_mode = #tpu.pipeline_mode<synchronous>, transform_indices = @transform_1, window_bounds = array<i64: 16, 64>}, {pipeline_mode = #tpu.pipeline_mode<synchronous>, transform_indices = @transform_2, window_bounds = array<i64: 1, 64>}, {pipeline_mode = #tpu.pipeline_mode<synchronous>, transform_indices = @transform_3, window_bounds = array<i64: 64, 32>}, {pipeline_mode = #tpu.pipeline_mode<synchronous>, transform_indices = @transform_4, window_bounds = array<i64: 1, 32>}, {pipeline_mode = #tpu.pipeline_mode<synchronous>, transform_indices = @transform_5, window_bounds = array<i64: 1, 32>}, {pipeline_mode = #tpu.pipeline_mode<synchronous>, transform_indices = @transform_6, window_bounds = array<i64: 1, 32>}, {transform_indices = @transform_7, window_bounds = array<i64: 128, 32>}]} {
    %c0 = arith.constant 0 : index
    %c0_0 = arith.constant 0 : index
    %0 = vector.load %arg1[%c0, %c0_0] : memref<128x16xf32, #tpu.memory_space<vmem>>, vector<128x16xf32>
    %c0_1 = arith.constant 0 : index
    %c0_2 = arith.constant 0 : index
    %1 = vector.load %arg2[%c0_1, %c0_2] : memref<16x64xf32, #tpu.memory_space<vmem>>, vector<16x64xf32>
    %cst = arith.constant dense<0.000000e+00> : vector<128x64xf32>
    %2 = tpu.matmul %0, %1, %cst {dimension_numbers = #tpu.dot_dimension_numbers<[1], [0], [0], [1], [0, 0, 1, 1], [], []>} : vector<128x16xf32>, vector<16x64xf32>, vector<128x64xf32> -> vector<128x64xf32>
    %c0_3 = arith.constant 0 : index
    %c0_4 = arith.constant 0 : index
    %3 = vector.load %arg3[%c0_3, %c0_4] : memref<1x64xf32, #tpu.memory_space<vmem>>, vector<1x64xf32>
    %4 = vector.broadcast %3 : vector<1x64xf32> to vector<128x64xf32>
    %5 = arith.addf %2, %4 : vector<128x64xf32>
    %cst_5 = arith.constant 0.000000e+00 : f32
    %6 = vector.broadcast %cst_5 : f32 to vector<128x64xf32>
    %7 = arith.maximumf %5, %6 : vector<128x64xf32>
    %c0_6 = arith.constant 0 : index
    %c0_7 = arith.constant 0 : index
    %8 = vector.load %arg4[%c0_6, %c0_7] : memref<64x32xf32, #tpu.memory_space<vmem>>, vector<64x32xf32>
    %cst_8 = arith.constant dense<0.000000e+00> : vector<128x32xf32>
    %9 = tpu.matmul %7, %8, %cst_8 {dimension_numbers = #tpu.dot_dimension_numbers<[1], [0], [0], [1], [0, 0, 1, 1], [], []>} : vector<128x64xf32>, vector<64x32xf32>, vector<128x32xf32> -> vector<128x32xf32>
    %c0_9 = arith.constant 0 : index
    %c0_10 = arith.constant 0 : index
    %10 = vector.load %arg5[%c0_9, %c0_10] : memref<1x32xf32, #tpu.memory_space<vmem>>, vector<1x32xf32>
    %11 = vector.broadcast %10 : vector<1x32xf32> to vector<128x32xf32>
    %12 = arith.addf %9, %11 : vector<128x32xf32>
    %cst_11 = arith.constant 0.000000e+00 : f32
    %13 = vector.broadcast %cst_11 : f32 to vector<128x32xf32>
    %14 = arith.maximumf %12, %13 : vector<128x32xf32>
    %cst_12 = arith.constant dense<0.000000e+00> : vector<128xf32>
    %15 = vector.multi_reduction <add>, %14, %cst_12 [1] : vector<128x32xf32> to vector<128xf32>
    %16 = vector.shape_cast %15 : vector<128xf32> to vector<128x1xf32>
    %cst_13 = arith.constant 3.200000e+01 : f32
    %17 = vector.broadcast %cst_13 : f32 to vector<128x1xf32>
    %18 = arith.divf %16, %17 : vector<128x1xf32>
    %19 = vector.broadcast %18 : vector<128x1xf32> to vector<128x32xf32>
    %20 = arith.subf %14, %19 : vector<128x32xf32>
    %21 = arith.mulf %20, %20 : vector<128x32xf32>
    %cst_14 = arith.constant dense<0.000000e+00> : vector<128xf32>
    %22 = vector.multi_reduction <add>, %21, %cst_14 [1] : vector<128x32xf32> to vector<128xf32>
    %23 = vector.shape_cast %22 : vector<128xf32> to vector<128x1xf32>
    %cst_15 = arith.constant 3.200000e+01 : f32
    %24 = vector.broadcast %cst_15 : f32 to vector<128x1xf32>
    %25 = arith.divf %23, %24 : vector<128x1xf32>
    %cst_16 = arith.constant 9.99999974E-6 : f32
    %26 = vector.broadcast %cst_16 : f32 to vector<128x1xf32>
    %27 = arith.addf %25, %26 : vector<128x1xf32>
    %28 = math.rsqrt %27 : vector<128x1xf32>
    %29 = vector.broadcast %28 : vector<128x1xf32> to vector<128x32xf32>
    %30 = arith.mulf %20, %29 : vector<128x32xf32>
    %c0_17 = arith.constant 0 : index
    %c0_18 = arith.constant 0 : index
    %31 = vector.load %arg6[%c0_17, %c0_18] : memref<1x32xf32, #tpu.memory_space<vmem>>, vector<1x32xf32>
    %32 = vector.broadcast %31 : vector<1x32xf32> to vector<128x32xf32>
    %33 = arith.mulf %30, %32 : vector<128x32xf32>
    %c0_19 = arith.constant 0 : index
    %c0_20 = arith.constant 0 : index
    %34 = vector.load %arg7[%c0_19, %c0_20] : memref<1x32xf32, #tpu.memory_space<vmem>>, vector<1x32xf32>
    %35 = vector.broadcast %34 : vector<1x32xf32> to vector<128x32xf32>
    %36 = arith.addf %33, %35 : vector<128x32xf32>
    %c0_21 = arith.constant 0 : index
    %c0_22 = arith.constant 0 : index
    %37 = vector.load %arg8[%c0_21, %c0_22] : memref<128x32xf32, #tpu.memory_space<vmem>>, vector<128x32xf32>
    tpu.vector_store %arg8[%c0_21, %c0_22], %36 {strides = array<i32>} : memref<128x32xf32, #tpu.memory_space<vmem>>, vector<128x32xf32>,
    return
  }
  func.func @transform_0(%arg0: i32) -> (i32, i32) {
    %c0_i32 = arith.constant 0 : i32
    %c0_i32_0 = arith.constant 0 : i32
    return %arg0, %c0_i32 : i32, i32
  }
  func.func @transform_1(%arg0: i32) -> (i32, i32) {
    %c0_i32 = arith.constant 0 : i32
    %c0_i32_0 = arith.constant 0 : i32
    %c0_i32_1 = arith.constant 0 : i32
    return %c0_i32, %c0_i32_0 : i32, i32
  }
  func.func @transform_2(%arg0: i32) -> (i32, i32) {
    %c0_i32 = arith.constant 0 : i32
    %c0_i32_0 = arith.constant 0 : i32
    %c0_i32_1 = arith.constant 0 : i32
    return %c0_i32, %c0_i32_0 : i32, i32
  }
  func.func @transform_3(%arg0: i32) -> (i32, i32) {
    %c0_i32 = arith.constant 0 : i32
    %c0_i32_0 = arith.constant 0 : i32
    %c0_i32_1 = arith.constant 0 : i32
    return %c0_i32, %c0_i32_0 : i32, i32
  }
  func.func @transform_4(%arg0: i32) -> (i32, i32) {
    %c0_i32 = arith.constant 0 : i32
    %c0_i32_0 = arith.constant 0 : i32
    %c0_i32_1 = arith.constant 0 : i32
    return %c0_i32, %c0_i32_0 : i32, i32
  }
  func.func @transform_5(%arg0: i32) -> (i32, i32) {
    %c0_i32 = arith.constant 0 : i32
    %c0_i32_0 = arith.constant 0 : i32
    %c0_i32_1 = arith.constant 0 : i32
    return %c0_i32, %c0_i32_0 : i32, i32
  }
  func.func @transform_6(%arg0: i32) -> (i32, i32) {
    %c0_i32 = arith.constant 0 : i32
    %c0_i32_0 = arith.constant 0 : i32
    %c0_i32_1 = arith.constant 0 : i32
    return %c0_i32, %c0_i32_0 : i32, i32
  }
  func.func @transform_7(%arg0: i32) -> (i32, i32) {
    %c0_i32 = arith.constant 0 : i32
    %c0_i32_0 = arith.constant 0 : i32
    return %arg0, %c0_i32 : i32, i32
  }
}

</mosaic_0001>

<bundles_post_ra>
// kernel: tpu_custom_call.1
= control target key start
LH: loop header
LB: loop body
LE: loop exit
PB: predicated region body
PF: predicated region fallthrough
CT: control target
= control target key end

     0   :  { %s1331_s24 = smov 0   ;;  %s1759_s0 = inlined_call_operand.vmem [shape: f32[256,16], index: 0, kind: input, shape index: {}]   ;;  %s1760_s1 = inlined_call_operand.vmem [shape: f32[16,64], index: 1, kind: input, shape index: {}]   ;;  %s1761_s2 = inlined_call_operand.vmem [shape: f32[1,64], index: 2, kind: input, shape index: {}]   ;;  %s1762_s3 = inlined_call_operand.vmem [shape: f32[64,32], index: 3, kind: input, shape index: {}]   ;;  %s1763_s4 = inlined_call_operand.vmem [shape: f32[1,32], index: 4, kind: input, shape index: {}]   ;;  %s1764_s5 = inlined_call_operand.vmem [shape: f32[1,32], index: 5, kind: input, shape index: {}]   ;;  %s1765_s6 = inlined_call_operand.vmem [shape: f32[1,32], index: 6, kind: input, shape index: {}]   ;;  %s1766_s7 = inlined_call_operand.vmem [shape: f32[256,32], index: 7, kind: output, shape index: {}]  }
   0x1 LB: > { %s1070_s25 = sadd.s32 4294967295, %s1289_s24   ;;  %p1074_p0 = scmp.ge.s32.totalorder %s1289_s24, 1  ;;  %s1289_s24 = sphi %s1331_s24, %s17_s24  }
   0x2   : > { %p238_p1 = scmp.lt.s32.totalorder %s1289_s24, 3 }
   0x4   : > { %p239_p2 = pnand %p1074_p0, %p238_p1 }
   0x5   : > { %s1075_s30 = sshll.u32 (!%p239_p2), %s1070_s25, 4 }
   0x6   : > { %242 = sbr.rel (%p239_p2) target bundleno = 758 (0x2f6), region = 48  ;;  %p271_p3 = scmp.lt.s32.totalorder (!%p239_p2), %s1075_s30, 31 }
   0xb   : > { %v299_v0 = vld [vmem:[%s1760_s1 + $0x8] sm:$0xff]  ;;  %v298_v1 = vld [vmem:[%s1760_s1] sm:$0xff]  ;;  %v524_v2 = vld [vmem:[%s1762_s3 + $0x38] sm:$0xff]  ;;  %s1768_s30 = smov (!%p271_p3, %s1075_s30), 31  ;;  %vm307_vm0 = vcmask 130048   ;;  %vm532_vm1 = vcmask 523264  }
   0xc   : > { %1159 = vmatprep.subr.mxu0 %v299_v0  ;;  %1227 = vmatprep.subr.mxu1 %v524_v2  ;;  %v523_v3 = vld [vmem:[%s1762_s3 + $0x30] sm:$0xff]  ;;  %v522_v4 = vld [vmem:[%s1762_s3 + $0x28] sm:$0xff]  ;;  %s1076_s14 = sshll.u32 %s1768_s30, 3  ;;  %v521_v5 = vld [vmem:[%s1762_s3 + $0x20] sm:$0xff]  ;;  %vm742_vm2 = vcmask 261120  }
   0xd   : > { %1160 = vmatpush3.msra.mxu0 %v299_v0  ;;  %1235 = vmatpush3.msra.mxu1 %v524_v2  ;;  %s1362_s17 = scalar_lea.vmem %s1759_s0, %s1076_s14  ;;  %v520_v9 = vld [vmem:[%s1762_s3 + $0x18] sm:$0xff]  ;;  %v519_v12 = vld [vmem:[%s1762_s3 + $0x10] sm:$0xff]  ;;  %v518_v15 = vld [vmem:[%s1762_s3 + $0x8] sm:$0xff]  ;;  %s1676_s18 = scalar_lea.vmem %s1766_s7, %s1076_s14 }
   0xe   : > { %1161 = vmatprep.subr.mxu0 %v298_v1  ;;  %1228 = vmatprep.subr.mxu1 %v523_v3  ;;  %v282_v6 = vld [vmem:[%s1362_s17] sm:$0xff]  ;;  %v283_v7 = vld [vmem:[%s1362_s17 + $0x8] sm:$0xff]  ;;  %v284_v8 = vld [vmem:[%s1362_s17 + $0x10] sm:$0xff] }
   0xf   : > { %1162 = vmatpush3.msra.mxu0 %v298_v1  ;;  %1236 = vmatpush3.msra.mxu1 %v523_v3  ;;  %v285_v10 = vld [vmem:[%s1362_s17 + $0x18] sm:$0xff]  ;;  %v286_v11 = vld [vmem:[%s1362_s17 + $0x20] sm:$0xff]  ;;  %v287_v13 = vld [vmem:[%s1362_s17 + $0x28] sm:$0xff] }
  0x10   : > { %1187 = vmatprep.subr.mxu0 %v524_v2  ;;  %1229 = vmatprep.subr.mxu1 %v522_v4  ;;  %v288_v14 = vld [vmem:[%s1362_s17 + $0x30] sm:$0xff]  ;;  %v289_v16 = vld [vmem:[%s1362_s17 + $0x38] sm:$0xff]  ;;  %v290_v17 = vld [vmem:[%s1362_s17 + $0x40] sm:$0xff] }
  0x11   : > { %1237 = vmatpush3.msra.mxu1 %v522_v4  ;;  %1163 = vmatprep.mubr.msk.f32.mxu0 %vm307_vm0, %v282_v6  ;;  %v291_v18 = vld [vmem:[%s1362_s17 + $0x48] sm:$0xff]  ;;  %v292_v19 = vld [vmem:[%s1362_s17 + $0x50] sm:$0xff]  ;;  %v293_v20 = vld [vmem:[%s1362_s17 + $0x58] sm:$0xff] }
  0x12   : > { %1230 = vmatprep.subr.mxu1 %v521_v5  ;;  %1164 = vmatmul.mubr.msk.f32.vlgmr.msra.gmra.mxu0 %vm307_vm0, %v283_v7  ;;  %v294_v21 = vld [vmem:[%s1362_s17 + $0x60] sm:$0xff]  ;;  %v295_v22 = vld [vmem:[%s1362_s17 + $0x68] sm:$0xff]  ;;  %v296_v23 = vld [vmem:[%s1362_s17 + $0x70] sm:$0xff] }
  0x13   : > { %1238 = vmatpush3.msra.mxu1 %v521_v5  ;;  %1166 = vmatprep.mubr.msk.f32.mxu0 %vm307_vm0, %v284_v8  ;;  %v297_v24 = vld [vmem:[%s1362_s17 + $0x78] sm:$0xff]  ;;  %v517_v25 = vld [vmem:[%s1762_s3] sm:$0xff] }
  0x14   : > { %1231 = vmatprep.subr.mxu1 %v520_v9  ;;  %1188 = vmatpush3.msra.mxu0 %v524_v2  ;;  %v1079_v26 = vld [vmem:[%s1761_s2] ss:$0 sm:$0xff] }
  0x15   : > { %1189 = vmatprep.subr.mxu0 %v523_v3  ;;  %1239 = vmatpush3.msra.mxu1 %v520_v9 }
  0x16   : > { %1190 = vmatpush3.msra.mxu0 %v523_v3  ;;  %1232 = vmatprep.subr.mxu1 %v519_v12 }
  0x17   : > { %1167 = vmatmul.mubr.msk.f32.gmra.mxu0 %vm307_vm0, %v285_v10  ;;  %1191 = vmatprep.subr.mxu0 %v522_v4 }
  0x18   : > { %1169 = vmatprep.mubr.msk.f32.mxu0 %vm307_vm0, %v286_v11  ;;  %1192 = vmatpush3.msra.mxu0 %v522_v4  ;;  %v1433_v11 = vld [vmem:[%s1763_s4] ss:$0 sm:$0xff] }
  0x19   : > { %1193 = vmatprep.subr.mxu0 %v521_v5  ;;  %1240 = vmatpush3.msra.mxu1 %v519_v12 }
  0x1a   : > { %1194 = vmatpush3.msra.mxu0 %v521_v5  ;;  %1233 = vmatprep.subr.mxu1 %v518_v15 }
  0x1b   : > { %1170 = vmatmul.mubr.msk.f32.gmra.mxu0 %vm307_vm0, %v287_v13  ;;  %1195 = vmatprep.subr.mxu0 %v520_v9 }
  0x1c   : > { %1172 = vmatprep.mubr.msk.f32.mxu0 %vm307_vm0, %v288_v14  ;;  %1196 = vmatpush3.msra.mxu0 %v520_v9 }
  0x1d   : > { %1197 = vmatprep.subr.mxu0 %v519_v12  ;;  %1241 = vmatpush3.msra.mxu1 %v518_v15 }
  0x1e   : > { %1198 = vmatpush3.msra.mxu0 %v519_v12  ;;  %1234 = vmatprep.subr.mxu1 %v517_v25 }
  0x1f   : > { %1173 = vmatmul.mubr.msk.f32.gmra.mxu0 %vm307_vm0, %v289_v16  ;;  %1199 = vmatprep.subr.mxu0 %v518_v15 }
  0x20   : > { %1175 = vmatprep.mubr.msk.f32.mxu0 %vm307_vm0, %v290_v17  ;;  %1200 = vmatpush3.msra.mxu0 %v518_v15 }
  0x21   : > { %1201 = vmatprep.subr.mxu0 %v517_v25  ;;  %1242 = vmatpush3.msra.mxu1 %v517_v25 }
  0x22   : > { %1202 = vmatpush3.msra.mxu0 %v517_v25 }
  0x23   : > { %1176 = vmatmul.mubr.msk.f32.gmra.mxu0 %vm307_vm0, %v291_v18 }
  0x24   : > { %1178 = vmatprep.mubr.msk.f32.mxu0 %vm307_vm0, %v292_v19 }
  0x27   : > { %1179 = vmatmul.mubr.msk.f32.gmra.mxu0 %vm307_vm0, %v293_v20 }
  0x28   : > { %1181 = vmatprep.mubr.msk.f32.mxu0 %vm307_vm0, %v294_v21 }
  0x2b   : > { %1182 = vmatmul.mubr.msk.f32.gmra.mxu0 %vm307_vm0, %v295_v22 }
  0x2c   : > { %1184 = vmatprep.mubr.msk.f32.mxu0 %vm307_vm0, %v296_v23 }
  0x2f   : > { %1185 = vmatmul.mubr.msk.f32.gmra.mxu0 %vm307_vm0, %v297_v24 }
  0xd2   : > { %v1165_v27 = vpop.f32.mrf.mxu0 }
  0xd3   : > { %v428_v28 = vadd.f32 %v1165_v27, %v1079_v26 }
  0xd4   : > { %v422_v29 = vpop.f32.mrf.mxu0 }
  0xd5   : > { %v423_v30 = vadd.f32 %v1079_v26, %v422_v29  ;;  %v502_v33 = vmax.f32 %v428_v28, 0.0 }
  0xd7   : > { %v1168_v31 = vpop.f32.mrf.mxu0  ;;  %v501_v32 = vmax.f32 %v423_v30, 0.0 }
  0xd8   : > { %v438_v34 = vadd.f32 %v1168_v31, %v1079_v26 }
  0xd9   : > { %v432_v35 = vpop.f32.mrf.mxu0  ;;  %1203 = vmatprep.mubr.msk.f32.mxu0 %vm532_vm1, %v501_v32 }
  0xda   : > { %v433_v36 = vadd.f32 %v1079_v26, %v432_v35  ;;  %1204 = vmatmul.mubr.msk.f32.vlgmr.msra.gmra.mxu0 %vm532_vm1, %v502_v33  ;;  %v504_v40 = vmax.f32 %v438_v34, 0.0 }
  0xdb   : > { %v1171_v37 = vpop.f32.mrf.mxu0 }
  0xdc   : > { %v503_v38 = vmax.f32 %v433_v36, 0.0  ;;  %v448_v39 = vadd.f32 %v1171_v37, %v1079_v26 }
  0xdd   : > { %v442_v41 = vpop.f32.mrf.mxu0 }
  0xde   : > { %v443_v42 = vadd.f32 %v1079_v26, %v442_v41  ;;  %1206 = vmatprep.mubr.msk.f32.mxu1 %vm532_vm1, %v503_v38  ;;  %v506_v43 = vmax.f32 %v448_v39, 0.0 }
  0xdf   : > { %v1174_v44 = vpop.f32.mrf.mxu0  ;;  %1207 = vmatmul.mubr.msk.f32.vlgmr.msra.gmra.mxu1 %vm532_vm1, %v504_v40 }
  0xe0   : > { %v505_v45 = vmax.f32 %v443_v42, 0.0  ;;  %v458_v46 = vadd.f32 %v1174_v44, %v1079_v26 }
  0xe1   : > { %v452_v47 = vpop.f32.mrf.mxu0 }
  0xe2   : > { %v453_v48 = vadd.f32 %v1079_v26, %v452_v47  ;;  %1209 = vmatprep.mubr.msk.f32.mxu1 %vm532_vm1, %v505_v45  ;;  %v508_v49 = vmax.f32 %v458_v46, 0.0 }
  0xe3   : > { %v1177_v50 = vpop.f32.mrf.mxu0  ;;  %1210 = vmatmul.mubr.msk.f32.gmra.mxu1 %vm532_vm1, %v506_v43 }
  0xe4   : > { %v507_v51 = vmax.f32 %v453_v48, 0.0  ;;  %v468_v52 = vadd.f32 %v1177_v50, %v1079_v26 }
  0xe5   : > { %v462_v53 = vpop.f32.mrf.mxu0 }
  0xe6   : > { %v463_v54 = vadd.f32 %v1079_v26, %v462_v53  ;;  %1212 = vmatprep.mubr.msk.f32.mxu1 %vm532_vm1, %v507_v51  ;;  %v510_v55 = vmax.f32 %v468_v52, 0.0 }
  0xe7   : > { %v1180_v56 = vpop.f32.mrf.mxu0  ;;  %1213 = vmatmul.mubr.msk.f32.gmra.mxu1 %vm532_vm1, %v508_v49 }
  0xe8   : > { %v509_v57 = vmax.f32 %v463_v54, 0.0  ;;  %v478_v58 = vadd.f32 %v1180_v56, %v1079_v26 }
  0xe9   : > { %v472_v59 = vpop.f32.mrf.mxu0 }
  0xea   : > { %v473_v60 = vadd.f32 %v1079_v26, %v472_v59  ;;  %1215 = vmatprep.mubr.msk.f32.mxu1 %vm532_vm1, %v509_v57  ;;  %v512_v61 = vmax.f32 %v478_v58, 0.0 }
  0xeb   : > { %v1183_v62 = vpop.f32.mrf.mxu0  ;;  %1216 = vmatmul.mubr.msk.f32.gmra.mxu1 %vm532_vm1, %v510_v55 }
  0xec   : > { %v511_v63 = vmax.f32 %v473_v60, 0.0  ;;  %v488_v0 = vadd.f32 %v1183_v62, %v1079_v26 }
  0xed   : > { %v482_v1 = vpop.f32.mrf.mxu0 }
  0xee   : > { %v483_v2 = vadd.f32 %v1079_v26, %v482_v1  ;;  %1218 = vmatprep.mubr.msk.f32.mxu1 %vm532_vm1, %v511_v63  ;;  %v514_v3 = vmax.f32 %v488_v0, 0.0 }
  0xef   : > { %v1186_v4 = vpop.f32.mrf.mxu0  ;;  %1219 = vmatmul.mubr.msk.f32.gmra.mxu1 %vm532_vm1, %v512_v61 }
  0xf0   : > { %v513_v5 = vmax.f32 %v483_v2, 0.0  ;;  %v498_v6 = vadd.f32 %v1186_v4, %v1079_v26 }
  0xf1   : > { %v492_v7 = vpop.f32.mrf.mxu0 }
  0xf2   : > { %v493_v8 = vadd.f32 %v1079_v26, %v492_v7  ;;  %1221 = vmatprep.mubr.msk.f32.mxu1 %vm532_vm1, %v513_v5  ;;  %v516_v9 = vmax.f32 %v498_v6, 0.0 }
  0xf3   : > { %1222 = vmatmul.mubr.msk.f32.gmra.mxu1 %vm532_vm1, %v514_v3 }
  0xf4   : > { %v515_v10 = vmax.f32 %v493_v8, 0.0 }
  0xf6   : > { %1224 = vmatprep.mubr.msk.f32.mxu1 %vm532_vm1, %v515_v10 }
  0xf7   : > { %1225 = vmatmul.mubr.msk.f32.gmra.mxu1 %vm532_vm1, %v516_v9 }
 0x19a   : > { %v1205_v12 = vpop.f32.mrf.mxu0 }
 0x19b   : > { %v1436_v13 = vadd.f32 %v1205_v12, %v1433_v11 }
 0x19c   : > { %v647_v14 = vpop.f32.mrf.mxu0 }
 0x19d   : > { %v727_v15 = vmax.f32 %v1436_v13, 0.0  ;;  %v1440_v16 = vadd.f32 %v1433_v11, %v647_v14 }
 0x19f   : > { %v1208_v17 = vpop.f32.mrf.mxu1  ;;  %v726_v18 = vmax.f32 %v1440_v16, 0.0  ;;  %v746_v20 = vsel %vm742_vm2, %v727_v15, 0.0 }
 0x1a0   : > { %v1444_v19 = vadd.f32 %v1208_v17, %v1433_v11  ;;  %747 = vadd.xlane.f32.xlu0 %v746_v20 }
 0x1a1   : > { %v657_v21 = vpop.f32.mrf.mxu1  ;;  %v743_v28 = vsel %vm742_vm2, %v726_v18, 0.0 }
 0x1a2   : > { %v729_v22 = vmax.f32 %v1444_v19, 0.0  ;;  %v1451_v23 = vadd.f32 %v1433_v11, %v657_v21 }
 0x1a3   : > { %v1211_v24 = vpop.f32.mrf.mxu1 }
 0x1a4   : > { %v728_v25 = vmax.f32 %v1451_v23, 0.0  ;;  %v1455_v26 = vadd.f32 %v1211_v24, %v1433_v11  ;;  %v752_v27 = vsel %vm742_vm2, %v729_v22, 0.0  ;;  %744 = vadd.xlane.f32.xlu0 %v743_v28 }
 0x1a5   : > { %753 = vadd.xlane.f32.xlu1 %v752_v27  ;;  %v667_v29 = vpop.f32.mrf.mxu1 }
 0x1a6   : > { %v1464_v30 = vadd.f32 %v1433_v11, %v667_v29  ;;  %v731_v32 = vmax.f32 %v1455_v26, 0.0  ;;  %v749_v35 = vsel %vm742_vm2, %v728_v25, 0.0 }
 0x1a7   : > { %v1214_v31 = vpop.f32.mrf.mxu1 }
 0x1a8   : > { %v730_v33 = vmax.f32 %v1464_v30, 0.0  ;;  %v1469_v34 = vadd.f32 %v1214_v31, %v1433_v11  ;;  %v758_v43 = vsel %vm742_vm2, %v731_v32, 0.0 }
 0x1a9   : > { %v677_v36 = vpop.f32.mrf.mxu1  ;;  %750 = vadd.xlane.f32.xlu1 %v749_v35 }
 0x1aa   : > { %v1475_v37 = vadd.f32 %v1433_v11, %v677_v36  ;;  %v755_v38 = vsel %vm742_vm2, %v730_v33, 0.0  ;;  %v733_v40 = vmax.f32 %v1469_v34, 0.0 }
 0x1ab   : > { %v1217_v39 = vpop.f32.mrf.mxu1  ;;  %756 = vadd.xlane.f32.xlu0 %v755_v38 }
 0x1ac   : > { %v732_v41 = vmax.f32 %v1475_v37, 0.0  ;;  %v1483_v42 = vadd.f32 %v1217_v39, %v1433_v11  ;;  %v764_v51 = vsel %vm742_vm2, %v733_v40, 0.0 }
 0x1ad   : > { %v687_v44 = vpop.f32.mrf.mxu1  ;;  %759 = vadd.xlane.f32.xlu1 %v758_v43 }
 0x1ae   : > { %v1489_v45 = vadd.f32 %v1433_v11, %v687_v44  ;;  %v761_v46 = vsel %vm742_vm2, %v732_v41, 0.0  ;;  %v735_v48 = vmax.f32 %v1483_v42, 0.0 }
 0x1af   : > { %v1220_v47 = vpop.f32.mrf.mxu1  ;;  %762 = vadd.xlane.f32.xlu0 %v761_v46 }
 0x1b0   : > { %v734_v49 = vmax.f32 %v1489_v45, 0.0  ;;  %v1497_v50 = vadd.f32 %v1220_v47, %v1433_v11  ;;  %v770_v59 = vsel %vm742_vm2, %v735_v48, 0.0 }
 0x1b1   : > { %v697_v52 = vpop.f32.mrf.mxu1  ;;  %765 = vadd.xlane.f32.xlu1 %v764_v51 }
 0x1b2   : > { %v1503_v53 = vadd.f32 %v1433_v11, %v697_v52  ;;  %v767_v54 = vsel %vm742_vm2, %v734_v49, 0.0  ;;  %v737_v56 = vmax.f32 %v1497_v50, 0.0 }
 0x1b3   : > { %v1223_v55 = vpop.f32.mrf.mxu1  ;;  %768 = vadd.xlane.f32.xlu0 %v767_v54 }
 0x1b4   : > { %v736_v57 = vmax.f32 %v1503_v53, 0.0  ;;  %v1511_v58 = vadd.f32 %v1223_v55, %v1433_v11  ;;  %v776_v3 = vsel %vm742_vm2, %v737_v56, 0.0 }
 0x1b5   : > { %v707_v60 = vpop.f32.mrf.mxu1  ;;  %771 = vadd.xlane.f32.xlu1 %v770_v59 }
 0x1b6   : > { %v1517_v61 = vadd.f32 %v1433_v11, %v707_v60  ;;  %v773_v62 = vsel %vm742_vm2, %v736_v57, 0.0  ;;  %v739_v0 = vmax.f32 %v1511_v58, 0.0 }
 0x1b7   : > { %v1226_v63 = vpop.f32.mrf.mxu1  ;;  %774 = vadd.xlane.f32.xlu0 %v773_v62 }
 0x1b8   : > { %v738_v1 = vmax.f32 %v1517_v61, 0.0  ;;  %v1525_v2 = vadd.f32 %v1226_v63, %v1433_v11  ;;  %v782_v9 = vsel %vm742_vm2, %v739_v0, 0.0 }
 0x1b9   : > { %v717_v4 = vpop.f32.mrf.mxu1  ;;  %777 = vadd.xlane.f32.xlu1 %v776_v3 }
 0x1ba   : > { %v1531_v5 = vadd.f32 %v1433_v11, %v717_v4  ;;  %v779_v6 = vsel %vm742_vm2, %v738_v1, 0.0  ;;  %v741_v7 = vmax.f32 %v1525_v2, 0.0 }
 0x1bb   : > { %780 = vadd.xlane.f32.xlu0 %v779_v6 }
 0x1bc   : > { %v740_v8 = vmax.f32 %v1531_v5, 0.0  ;;  %v788_v11 = vsel %vm742_vm2, %v741_v7, 0.0 }
 0x1bd   : > { %783 = vadd.xlane.f32.xlu1 %v782_v9 }
 0x1be   : > { %v785_v10 = vsel %vm742_vm2, %v740_v8, 0.0 }
 0x1bf   : > { %786 = vadd.xlane.f32.xlu0 %v785_v10 }
 0x1c1   : > { %789 = vadd.xlane.f32.xlu1 %v788_v11 }
 0x229   : > { %v748_v12 = vpop.xlane.xlu0 %747 }
 0x22a   : > { %v793_v14 = vmul.f32 0.03125, %v748_v12 }
 0x22c   : > { %v1549_v17 = vsub.f32 %v727_v15, %v793_v14 }
 0x22d   : > { %v745_v21 = vpop.xlane.xlu0 %744 }
 0x22e   : > { %v754_v20 = vpop.xlane.xlu1 %753  ;;  %v792_v27 = vmul.f32 0.03125, %v745_v21  ;;  %v825_v28 = vmul.f32 %v1549_v17, %v1549_v17 }
 0x22f   : > { %v795_v24 = vmul.f32 0.03125, %v754_v20 }
 0x230   : > { %v1559_v31 = vsub.f32 %v726_v18, %v792_v27  ;;  %v843_v35 = vsel %vm742_vm2, %v825_v28, 0.0 }
 0x231   : > { %v1555_v29 = vsub.f32 %v729_v22, %v795_v24  ;;  %844 = vadd.xlane.f32.xlu1 %v843_v35 }
 0x232   : > { %v751_v13 = vpop.xlane.xlu1 %750  ;;  %v824_v38 = vmul.f32 %v1559_v31, %v1559_v31 }
 0x233   : > { %v794_v15 = vmul.f32 0.03125, %v751_v13  ;;  %v827_v36 = vmul.f32 %v1555_v29, %v1555_v29 }
 0x234   : > { %v757_v39 = vpop.xlane.xlu0 %756  ;;  %v840_v18 = vsel %vm742_vm2, %v824_v38, 0.0 }
 0x235   : > { %v1568_v19 = vsub.f32 %v728_v25, %v794_v15  ;;  %v796_v22 = vmul.f32 0.03125, %v757_v39  ;;  %v849_v16 = vsel %vm742_vm2, %v827_v36, 0.0  ;;  %841 = vadd.xlane.f32.xlu0 %v840_v18 }
 0x236   : > { %v760_v43 = vpop.xlane.xlu1 %759  ;;  %850 = vadd.xlane.f32.xlu1 %v849_v16 }
 0x237   : > { %v1574_v44 = vsub.f32 %v730_v33, %v796_v22  ;;  %v797_v46 = vmul.f32 0.03125, %v760_v43  ;;  %v826_v47 = vmul.f32 %v1568_v19, %v1568_v19 }
 0x238   : > { %v763_v51 = vpop.xlane.xlu0 %762 }
 0x239   : > { %v1580_v23 = vsub.f32 %v731_v32, %v797_v46  ;;  %v798_v25 = vmul.f32 0.03125, %v763_v51  ;;  %v846_v52 = vsel %vm742_vm2, %v826_v47, 0.0  ;;  %v828_v54 = vmul.f32 %v1574_v44, %v1574_v44 }
 0x23a   : > { %v766_v55 = vpop.xlane.xlu1 %765  ;;  %847 = vadd.xlane.f32.xlu0 %v846_v52 }
 0x23b   : > { %v1587_v30 = vsub.f32 %v732_v41, %v798_v25  ;;  %v799_v33 = vmul.f32 0.03125, %v766_v55  ;;  %v829_v59 = vmul.f32 %v1580_v23, %v1580_v23  ;;  %v852_v26 = vsel %vm742_vm2, %v828_v54, 0.0 }
 0x23c   : > { %v769_v60 = vpop.xlane.xlu0 %768 }
 0x23d   : > { %v1594_v32 = vsub.f32 %v733_v40, %v799_v33  ;;  %v800_v62 = vmul.f32 0.03125, %v769_v60  ;;  %v855_v63 = vsel %vm742_vm2, %v829_v59, 0.0  ;;  %v830_v3 = vmul.f32 %v1587_v30, %v1587_v30 }
 0x23e   : > { %v772_v37 = vpop.xlane.xlu1 %771  ;;  %856 = vadd.xlane.f32.xlu1 %v855_v63  ;;  %853 = vadd.xlane.f32.xlu0 %v852_v26 }
 0x23f   : > { %v1601_v41 = vsub.f32 %v734_v49, %v800_v62  ;;  %v801_v4 = vmul.f32 0.03125, %v772_v37  ;;  %v831_v6 = vmul.f32 %v1594_v32, %v1594_v32  ;;  %v858_v40 = vsel %vm742_vm2, %v830_v3, 0.0 }
 0x240   : > { %v775_v34 = vpop.xlane.xlu0 %774 }
 0x241   : > { %v1608_v9 = vsub.f32 %v735_v48, %v801_v4  ;;  %v802_v10 = vmul.f32 0.03125, %v775_v34  ;;  %v861_v11 = vsel %vm742_vm2, %v831_v6, 0.0  ;;  %v832_v12 = vmul.f32 %v1601_v41, %v1601_v41 }
 0x242   : > { %v778_v45 = vpop.xlane.xlu1 %777  ;;  %862 = vadd.xlane.f32.xlu1 %v861_v11  ;;  %859 = vadd.xlane.f32.xlu0 %v858_v40 }
 0x243   : > { %v1615_v49 = vsub.f32 %v736_v57, %v802_v10  ;;  %v803_v14 = vmul.f32 0.03125, %v778_v45  ;;  %v833_v20 = vmul.f32 %v1608_v9, %v1608_v9  ;;  %v864_v48 = vsel %vm742_vm2, %v832_v12, 0.0  ;;  %v1662_v45 = vld [vmem:[%s1764_s5] ss:$0 sm:$0xff] }
 0x244   : > { %v781_v42 = vpop.xlane.xlu0 %780 }
 0x245   : > { %v1622_v21 = vsub.f32 %v737_v56, %v803_v14  ;;  %v804_v24 = vmul.f32 0.03125, %v781_v42  ;;  %v867_v27 = vsel %vm742_vm2, %v833_v20, 0.0  ;;  %v834_v28 = vmul.f32 %v1615_v49, %v1615_v49 }
 0x246   : > { %v784_v53 = vpop.xlane.xlu1 %783  ;;  %868 = vadd.xlane.f32.xlu1 %v867_v27  ;;  %865 = vadd.xlane.f32.xlu0 %v864_v48  ;;  %v1668_v48 = vld [vmem:[%s1765_s6] ss:$0 sm:$0xff] }
 0x247   : > { %v1629_v57 = vsub.f32 %v738_v1, %v804_v24  ;;  %v805_v35 = vmul.f32 0.03125, %v784_v53  ;;  %v835_v13 = vmul.f32 %v1622_v21, %v1622_v21  ;;  %v870_v56 = vsel %vm742_vm2, %v834_v28, 0.0 }
 0x248   : > { %v787_v50 = vpop.xlane.xlu0 %786 }
 0x249   : > { %v1636_v15 = vsub.f32 %v739_v0, %v805_v35  ;;  %v806_v36 = vmul.f32 0.03125, %v787_v50  ;;  %v873_v38 = vsel %vm742_vm2, %v835_v13, 0.0  ;;  %v836_v39 = vmul.f32 %v1629_v57, %v1629_v57 }
 0x24a   : > { %v790_v61 = vpop.xlane.xlu1 %789  ;;  %874 = vadd.xlane.f32.xlu1 %v873_v38  ;;  %871 = vadd.xlane.f32.xlu0 %v870_v56 }
 0x24b   : > { %v1643_v1 = vsub.f32 %v740_v8, %v806_v36  ;;  %v807_v22 = vmul.f32 0.03125, %v790_v61  ;;  %v837_v16 = vmul.f32 %v1636_v15, %v1636_v15  ;;  %v876_v18 = vsel %vm742_vm2, %v836_v39, 0.0 }
 0x24d   : > { %v1649_v58 = vsub.f32 %v741_v7, %v807_v22  ;;  %v879_v0 = vsel %vm742_vm2, %v837_v16, 0.0  ;;  %v838_v43 = vmul.f32 %v1643_v1, %v1643_v1 }
 0x24e   : > { %880 = vadd.xlane.f32.xlu1 %v879_v0  ;;  %877 = vadd.xlane.f32.xlu0 %v876_v18 }
 0x24f   : > { %v839_v5 = vmul.f32 %v1649_v58, %v1649_v58  ;;  %v882_v46 = vsel %vm742_vm2, %v838_v43, 0.0 }
 0x251   : > { %v885_v8 = vsel %vm742_vm2, %v839_v5, 0.0 }
 0x252   : > { %886 = vadd.xlane.f32.xlu1 %v885_v8  ;;  %883 = vadd.xlane.f32.xlu0 %v882_v46 }
 0x2ba   : > { %v845_v2 = vpop.xlane.xlu1 %844 }
 0x2bb   : > { %v889_v7 = vmul.f32 0.03125, %v845_v2 }
 0x2bd   : > { %v905_v47 = vadd.f32 1e-05, %v889_v7 }
 0x2be   : > { %v842_v25 = vpop.xlane.xlu0 %841 }
 0x2bf   : > { %v851_v51 = vpop.xlane.xlu1 %850  ;;  %1251 = vrsqrt.f32 %v905_v47  ;;  %v888_v54 = vmul.f32 0.03125, %v842_v25 }
 0x2c0   : > { %v891_v52 = vmul.f32 0.03125, %v851_v51 }
 0x2c1   : > { %v904_v33 = vadd.f32 1e-05, %v888_v54 }
 0x2c2   : > { %v907_v55 = vadd.f32 1e-05, %v891_v52 }
 0x2c3   : > { %v848_v59 = vpop.xlane.xlu0 %847 }
 0x2c4   : > { %1253 = vrsqrt.f32 %v907_v55  ;;  %v890_v60 = vmul.f32 0.03125, %v848_v59 }
 0x2c5   : > { %1255 = vrsqrt.f32 %v904_v33 }
 0x2c6   : > { %v906_v26 = vadd.f32 1e-05, %v890_v60 }
 0x2c7   : > { %v857_v62 = vpop.xlane.xlu1 %856  ;;  %v854_v63 = vpop.xlane.xlu0 %853 }
 0x2c8   : > { %1257 = vrsqrt.f32 %v906_v26  ;;  %v893_v3 = vmul.f32 0.03125, %v857_v62  ;;  %v892_v37 = vmul.f32 0.03125, %v854_v63 }
 0x2ca   : > { %v909_v4 = vadd.f32 1e-05, %v893_v3  ;;  %v908_v6 = vadd.f32 1e-05, %v892_v37 }
 0x2cb   : > { %v863_v34 = vpop.xlane.xlu1 %862  ;;  %v860_v40 = vpop.xlane.xlu0 %859 }
 0x2cc   : > { %1259 = vrsqrt.f32 %v909_v4  ;;  %v895_v10 = vmul.f32 0.03125, %v863_v34  ;;  %v894_v11 = vmul.f32 0.03125, %v860_v40  ;;  %v1252_v12 = vpop.eup %1251 }
 0x2cd   : > { %1261 = vrsqrt.f32 %v908_v6  ;;  %v937_v14 = vmul.f32 %v1252_v12, %v1549_v17 }
 0x2ce   : > { %v911_v20 = vadd.f32 1e-05, %v895_v10  ;;  %v910_v42 = vadd.f32 1e-05, %v894_v11 }
 0x2cf   : > { %v869_v24 = vpop.xlane.xlu1 %868  ;;  %v866_v27 = vpop.xlane.xlu0 %865  ;;  %v960_v28 = vmul.f32 %v1662_v45, %v937_v14 }
 0x2d0   : > { %1263 = vrsqrt.f32 %v911_v20  ;;  %v897_v53 = vmul.f32 0.03125, %v869_v24  ;;  %v896_v35 = vmul.f32 0.03125, %v866_v27 }
 0x2d1   : > { %v1254_v13 = vpop.eup %1253  ;;  %1265 = vrsqrt.f32 %v910_v42  ;;  %v983_v50 = vadd.f32 %v1668_v48, %v960_v28 }
 0x2d2   : > { %v1256_v17 = vpop.eup %1255  ;;  %v939_v56 = vmul.f32 %v1254_v13, %v1555_v29  ;;  %v913_v36 = vadd.f32 1e-05, %v897_v53  ;;  %v912_v38 = vadd.f32 1e-05, %v896_v35 }
 0x2d3   : > { %v936_v39 = vmul.f32 %v1256_v17, %v1559_v31  ;;  %v875_v61 = vpop.xlane.xlu1 %874  ;;  %v872_v22 = vpop.xlane.xlu0 %871  ;;  %999 = vst.msk [vmem:[%s1676_s18 + $0x8] sm:$0xff] %vm742_vm2, %v983_v50 }
 0x2d4   : > { %v962_v16 = vmul.f32 %v1662_v45, %v939_v56  ;;  %1267 = vrsqrt.f32 %v913_v36  ;;  %v899_v0 = vmul.f32 0.03125, %v875_v61  ;;  %v898_v18 = vmul.f32 0.03125, %v872_v22 }
 0x2d5   : > { %v1258_v43 = vpop.eup %1257  ;;  %v959_v5 = vmul.f32 %v1662_v45, %v936_v39  ;;  %1269 = vrsqrt.f32 %v912_v38 }
 0x2d6   : > { %v985_v29 = vadd.f32 %v1668_v48, %v962_v16  ;;  %v938_v8 = vmul.f32 %v1258_v43, %v1568_v19  ;;  %v915_v31 = vadd.f32 1e-05, %v899_v0  ;;  %v914_v46 = vadd.f32 1e-05, %v898_v18 }
 0x2d7   : > { %v982_v2 = vadd.f32 %v1668_v48, %v959_v5  ;;  %v881_v7 = vpop.xlane.xlu1 %880  ;;  %v878_v47 = vpop.xlane.xlu0 %877 }
 0x2d8   : > { %1001 = vst.msk [vmem:[%s1676_s18 + $0x18] sm:$0xff] %vm742_vm2, %v985_v29  ;;  %v961_v51 = vmul.f32 %v1662_v45, %v938_v8  ;;  %1271 = vrsqrt.f32 %v915_v31  ;;  %v901_v25 = vmul.f32 0.03125, %v881_v7  ;;  %v900_v52 = vmul.f32 0.03125, %v878_v47 }
 0x2d9   : > { %v1260_v54 = vpop.eup %1259  ;;  %998 = vst.msk [vmem:[%s1676_s18] sm:$0xff] %vm742_vm2, %v982_v2  ;;  %1273 = vrsqrt.f32 %v914_v46 }
 0x2da   : > { %v1262_v55 = vpop.eup %1261  ;;  %v984_v19 = vadd.f32 %v1668_v48, %v961_v51  ;;  %v941_v33 = vmul.f32 %v1260_v54, %v1580_v23  ;;  %v917_v59 = vadd.f32 1e-05, %v901_v25  ;;  %v916_v60 = vadd.f32 1e-05, %v900_v52 }
 0x2db   : > { %v940_v26 = vmul.f32 %v1262_v55, %v1574_v44  ;;  %v887_v62 = vpop.xlane.xlu1 %886  ;;  %v884_v63 = vpop.xlane.xlu0 %883 }
 0x2dc   : > { %1000 = vst.msk [vmem:[%s1676_s18 + $0x10] sm:$0xff] %vm742_vm2, %v984_v19  ;;  %v964_v3 = vmul.f32 %v1662_v45, %v941_v33  ;;  %1275 = vrsqrt.f32 %v917_v59  ;;  %v903_v37 = vmul.f32 0.03125, %v887_v62  ;;  %v902_v4 = vmul.f32 0.03125, %v884_v63 }
 0x2dd   : > { %v1264_v6 = vpop.eup %1263  ;;  %v963_v34 = vmul.f32 %v1662_v45, %v940_v26  ;;  %1277 = vrsqrt.f32 %v916_v60 }
 0x2de   : > { %v1266_v23 = vpop.eup %1265  ;;  %v987_v40 = vadd.f32 %v1668_v48, %v964_v3  ;;  %v943_v44 = vmul.f32 %v1264_v6, %v1594_v32  ;;  %v919_v10 = vadd.f32 1e-05, %v903_v37  ;;  %v918_v11 = vadd.f32 1e-05, %v902_v4 }
 0x2df   : > { %v986_v12 = vadd.f32 %v1668_v48, %v963_v34  ;;  %v942_v14 = vmul.f32 %v1266_v23, %v1587_v30 }
 0x2e0   : > { %1003 = vst.msk [vmem:[%s1676_s18 + $0x28] sm:$0xff] %vm742_vm2, %v987_v40  ;;  %v966_v20 = vmul.f32 %v1662_v45, %v943_v44  ;;  %1279 = vrsqrt.f32 %v919_v10 }
 0x2e1   : > { %v1268_v42 = vpop.eup %1267  ;;  %1002 = vst.msk [vmem:[%s1676_s18 + $0x20] sm:$0xff] %vm742_vm2, %v986_v12  ;;  %v965_v24 = vmul.f32 %v1662_v45, %v942_v14  ;;  %1281 = vrsqrt.f32 %v918_v11 }
 0x2e2   : > { %v1270_v32 = vpop.eup %1269  ;;  %v989_v27 = vadd.f32 %v1668_v48, %v966_v20  ;;  %v945_v28 = vmul.f32 %v1268_v42, %v1608_v9 }
 0x2e3   : > { %v988_v30 = vadd.f32 %v1668_v48, %v965_v24  ;;  %v944_v53 = vmul.f32 %v1270_v32, %v1601_v41 }
 0x2e4   : > { %1005 = vst.msk [vmem:[%s1676_s18 + $0x38] sm:$0xff] %vm742_vm2, %v989_v27  ;;  %v968_v35 = vmul.f32 %v1662_v45, %v945_v28 }
 0x2e5   : > { %v1272_v13 = vpop.eup %1271  ;;  %1004 = vst.msk [vmem:[%s1676_s18 + $0x30] sm:$0xff] %vm742_vm2, %v988_v30  ;;  %v967_v17 = vmul.f32 %v1662_v45, %v944_v53 }
 0x2e6   : > { %v1274_v50 = vpop.eup %1273  ;;  %v991_v56 = vadd.f32 %v1668_v48, %v968_v35  ;;  %v947_v9 = vmul.f32 %v1272_v13, %v1622_v21 }
 0x2e7   : > { %v990_v36 = vadd.f32 %v1668_v48, %v967_v17  ;;  %v946_v41 = vmul.f32 %v1274_v50, %v1615_v49 }
 0x2e8   : > { %1007 = vst.msk [vmem:[%s1676_s18 + $0x48] sm:$0xff] %vm742_vm2, %v991_v56  ;;  %v970_v38 = vmul.f32 %v1662_v45, %v947_v9 }
 0x2e9   : > { %v1276_v39 = vpop.eup %1275  ;;  %1006 = vst.msk [vmem:[%s1676_s18 + $0x40] sm:$0xff] %vm742_vm2, %v990_v36  ;;  %v969_v61 = vmul.f32 %v1662_v45, %v946_v41 }
 0x2ea   : > { %v1278_v22 = vpop.eup %1277  ;;  %v993_v16 = vadd.f32 %v1668_v48, %v970_v38  ;;  %v949_v21 = vmul.f32 %v1276_v39, %v1636_v15 }
 0x2eb   : > { %v992_v0 = vadd.f32 %v1668_v48, %v969_v61  ;;  %v948_v49 = vmul.f32 %v1278_v22, %v1629_v57 }
 0x2ec   : > { %1009 = vst.msk [vmem:[%s1676_s18 + $0x58] sm:$0xff] %vm742_vm2, %v993_v16  ;;  %v972_v18 = vmul.f32 %v1662_v45, %v949_v21 }
 0x2ed   : > { %v1280_v43 = vpop.eup %1279  ;;  %1008 = vst.msk [vmem:[%s1676_s18 + $0x50] sm:$0xff] %vm742_vm2, %v992_v0  ;;  %v971_v5 = vmul.f32 %v1662_v45, %v948_v49 }
 0x2ee   : > { %v1282_v29 = vpop.eup %1281  ;;  %v995_v8 = vadd.f32 %v1668_v48, %v972_v18  ;;  %v951_v15 = vmul.f32 %v1280_v43, %v1649_v58 }
 0x2ef   : > { %v994_v31 = vadd.f32 %v1668_v48, %v971_v5  ;;  %v950_v57 = vmul.f32 %v1282_v29, %v1643_v1 }
 0x2f0   : > { %1011 = vst.msk [vmem:[%s1676_s18 + $0x68] sm:$0xff] %vm742_vm2, %v995_v8  ;;  %v974_v46 = vmul.f32 %v1662_v45, %v951_v15 }
 0x2f1   : > { %1010 = vst.msk [vmem:[%s1676_s18 + $0x60] sm:$0xff] %vm742_vm2, %v994_v31  ;;  %v973_v2 = vmul.f32 %v1662_v45, %v950_v57 }
 0x2f2   : > { %v997_v7 = vadd.f32 %v1668_v48, %v974_v46 }
 0x2f3   : > { %v996_v47 = vadd.f32 %v1668_v48, %v973_v2 }
 0x2f4   : > { %1013 = vst.msk [vmem:[%s1676_s18 + $0x78] sm:$0xff] %vm742_vm2, %v997_v7 }
 0x2f5   : > { %1012 = vst.msk [vmem:[%s1676_s18 + $0x70] sm:$0xff] %vm742_vm2, %v996_v47 }
 0x2f6 PF: > { %s17_s24 = sadd.s32 1, %s1289_s24  }
 0x2f7   : > { %p14_p4 = scmp.ge.s32.totalorder %s17_s24, 4  }
 0x2f9   :  { %16 = sbr.rel (!%p14_p4) target bundleno = 1 (0x1), region = 78 }

</bundles_post_ra>
